<compile_context>
chip_gen: v5e
topology: v5e:2x2
jax: 0.10.0
libtpu: 0.0.40
codegen_flags: <defaults>
</compile_context>

<pallas_src>
import jax
import jax.numpy as jnp
from jax.experimental import pallas as pl
from jax.experimental.pallas import tpu as pltpu

EPS = 1e-5  # nn.InstanceNorm2d default


def adain_kernel(x_ref, st_ref, w_ref, b_ref, o_ref):
    # x_ref : (1, C, HW)   current batch element, spatial on lanes
    # st_ref: (S, N)       style vectors, transposed (full array, tiny)
    # w_ref : (2C, S)      fc weight (PyTorch layout)
    # b_ref : (2C, 1)      fc bias as a column
    # o_ref : (1, C, HW)
    bi = pl.program_id(0)
    _, C, HW = x_ref.shape

    x = x_ref[0]  # (C, HW) — lane-dense tile

    # ---- fused fc: h = W @ s^T + b -> (2C, N); pick this batch's column ----
    h = jnp.dot(w_ref[...], st_ref[...],
                preferred_element_type=jnp.float32) + b_ref[...]       # (2C, N)
    lane = jax.lax.broadcasted_iota(jnp.int32, h.shape, 1)
    col = jnp.sum(jnp.where(lane == bi, h, 0.0), axis=1, keepdims=True)  # (2C,1)
    gamma = col[:C, :]   # (C, 1)
    beta = col[C:, :]    # (C, 1)

    # ---- instance norm over H*W (biased variance), then affine ----
    mean = jnp.mean(x, axis=1, keepdims=True)          # (C, 1)
    cx = x - mean
    var = jnp.mean(cx * cx, axis=1, keepdims=True)     # (C, 1)
    scale = (1.0 + gamma) * jax.lax.rsqrt(var + EPS)   # (C, 1)

    o_ref[0] = scale * cx + beta


def adain_pallas(x, s, w_fc, b_fc):
    """x: (N, C, H, W) f32, s: (N, S) f32, w_fc: (2C, S), b_fc: (2C,)."""
    N, C, H, W = x.shape
    S = s.shape[1]
    HW = H * W

    x3 = x.reshape(N, C, HW)                 # free reshape, no transpose
    st = jnp.transpose(s).astype(jnp.float32)          # (S, N), tiny
    w = w_fc.astype(jnp.float32)                        # (2C, S)
    b = b_fc.reshape(2 * C, 1).astype(jnp.float32)      # (2C, 1)

    out3 = pl.pallas_call(
        adain_kernel,
        out_shape=jax.ShapeDtypeStruct((N, C, HW), jnp.float32),
        grid_spec=pltpu.PrefetchScalarGridSpec(
            num_scalar_prefetch=0,
            grid=(N,),
            in_specs=[
                pl.BlockSpec((1, C, HW), lambda bi: (bi, 0, 0)),
                pl.BlockSpec((S, N), lambda bi: (0, 0)),
                pl.BlockSpec((2 * C, S), lambda bi: (0, 0)),
                pl.BlockSpec((2 * C, 1), lambda bi: (0, 0)),
            ],
            out_specs=pl.BlockSpec((1, C, HW), lambda bi: (bi, 0, 0)),
        ),
        compiler_params=pltpu.CompilerParams(
            dimension_semantics=("parallel",)),
    )(x3, st, w, b)
    return out3.reshape(N, C, H, W)


def adain_reference(x, s, w_fc, b_fc):
    """Pure-JAX reference matching the PyTorch AdaIN forward."""
    N, C, H, W = x.shape
    h = s @ w_fc.T + b_fc                     # (N, 2C)
    gamma = h[:, :C].reshape(N, C, 1, 1)
    beta = h[:, C:].reshape(N, C, 1, 1)
    mean = x.mean(axis=(2, 3), keepdims=True)
    var = x.var(axis=(2, 3), keepdims=True)   # biased, like InstanceNorm2d
    xn = (x - mean) / jnp.sqrt(var + EPS)
    return (1.0 + gamma) * xn + beta


if __name__ == "__main__":
    N, C, H, W, S = 2, 4, 16, 16, 8   # batch=2, num_features=4, style_dim=8

    key = jax.random.PRNGKey(0)
    k = jax.random.split(key, 4)
    x = jax.random.normal(k[0], (N, C, H, W), jnp.float32)
    s = jax.random.normal(k[1], (N, S), jnp.float32)
    # deterministic synthetic fc parameters (PyTorch Linear layout: (2C, S))
    w_fc = jax.random.normal(k[2], (2 * C, S), jnp.float32) * 0.1
    b_fc = jax.random.normal(k[3], (2 * C,), jnp.float32) * 0.1

    out = adain_pallas(x, s, w_fc, b_fc)
    jax.block_until_ready(out)

    ref = adain_reference(x, s, w_fc, b_fc)
    assert out.shape == (N, C, H, W)
    max_err = float(jnp.max(jnp.abs(out - ref)))
    assert jnp.allclose(out, ref, atol=1e-4, rtol=1e-4), max_err
    print("KERNEL_OK")
</pallas_src>

<mosaic_0001>
module attributes {stable_mosaic.version = 11 : i64} {
  func.func @adain_kernel(%arg0: i32, %arg1: memref<1x4x256xf32, #tpu.memory_space<vmem>>, %arg2: memref<8x2xf32, #tpu.memory_space<vmem>>, %arg3: memref<8x8xf32, #tpu.memory_space<vmem>>, %arg4: memref<8x1xf32, #tpu.memory_space<vmem>>, %arg5: memref<1x4x256xf32, #tpu.memory_space<vmem>>) attributes {dimension_semantics = [#tpu.dimension_semantics<parallel>], iteration_bounds = array<i64: 2>, scalar_prefetch = 0 : i64, scratch_operands = 0 : i64, tpu.core_type = #tpu.core_type<tc>, window_params = [{transform_indices = @transform_0, window_bounds = array<i64: 1, 4, 256>}, {pipeline_mode = #tpu.pipeline_mode<synchronous>, transform_indices = @transform_1, window_bounds = array<i64: 8, 2>}, {pipeline_mode = #tpu.pipeline_mode<synchronous>, transform_indices = @transform_2, window_bounds = array<i64: 8, 8>}, {pipeline_mode = #tpu.pipeline_mode<synchronous>, transform_indices = @transform_3, window_bounds = array<i64: 8, 1>}, {transform_indices = @transform_4, window_bounds = array<i64: 1, 4, 256>}]} {
    %c0 = arith.constant 0 : index
    %c0_0 = arith.constant 0 : index
    %c0_1 = arith.constant 0 : index
    %0 = vector.load %arg1[%c0, %c0_0, %c0_1] : memref<1x4x256xf32, #tpu.memory_space<vmem>>, vector<1x4x256xf32>
    %1 = vector.shape_cast %0 : vector<1x4x256xf32> to vector<4x256xf32>
    %c0_2 = arith.constant 0 : index
    %c0_3 = arith.constant 0 : index
    %2 = vector.load %arg3[%c0_2, %c0_3] : memref<8x8xf32, #tpu.memory_space<vmem>>, vector<8x8xf32>
    %c0_4 = arith.constant 0 : index
    %c0_5 = arith.constant 0 : index
    %3 = vector.load %arg2[%c0_4, %c0_5] : memref<8x2xf32, #tpu.memory_space<vmem>>, vector<8x2xf32>
    %cst = arith.constant dense<0.000000e+00> : vector<8x2xf32>
    %4 = tpu.matmul %2, %3, %cst {dimension_numbers = #tpu.dot_dimension_numbers<[1], [0], [0], [1], [0, 0, 1, 1], [], []>} : vector<8x8xf32>, vector<8x2xf32>, vector<8x2xf32> -> vector<8x2xf32>
    %c0_6 = arith.constant 0 : index
    %c0_7 = arith.constant 0 : index
    %5 = vector.load %arg4[%c0_6, %c0_7] : memref<8x1xf32, #tpu.memory_space<vmem>>, vector<8x1xf32>
    %6 = vector.broadcast %5 : vector<8x1xf32> to vector<8x2xf32>
    %7 = arith.addf %4, %6 : vector<8x2xf32>
    %8 = tpu.iota {dimensions = array<i32: 1>} : vector<8x2xi32>
    %9 = vector.broadcast %arg0 : i32 to vector<8x2xi32>
    %10 = arith.cmpi eq, %8, %9 : vector<8x2xi32>
    %cst_8 = arith.constant 0.000000e+00 : f32
    %11 = vector.broadcast %cst_8 : f32 to vector<8x2xf32>
    %12 = arith.select %10, %7, %11 : vector<8x2xi1>, vector<8x2xf32>
    %cst_9 = arith.constant dense<0.000000e+00> : vector<8xf32>
    %13 = vector.multi_reduction <add>, %12, %cst_9 [1] : vector<8x2xf32> to vector<8xf32>
    %14 = vector.shape_cast %13 : vector<8xf32> to vector<8x1xf32>
    %15 = vector.extract_strided_slice %14 {offsets = [0, 0], sizes = [4, 1], strides = [1, 1]} : vector<8x1xf32> to vector<4x1xf32>
    %16 = vector.extract_strided_slice %14 {offsets = [4, 0], sizes = [4, 1], strides = [1, 1]} : vector<8x1xf32> to vector<4x1xf32>
    %cst_10 = arith.constant dense<0.000000e+00> : vector<4xf32>
    %17 = vector.multi_reduction <add>, %1, %cst_10 [1] : vector<4x256xf32> to vector<4xf32>
    %18 = vector.shape_cast %17 : vector<4xf32> to vector<4x1xf32>
    %cst_11 = arith.constant 2.560000e+02 : f32
    %19 = vector.broadcast %cst_11 : f32 to vector<4x1xf32>
    %20 = arith.divf %18, %19 : vector<4x1xf32>
    %21 = vector.broadcast %20 : vector<4x1xf32> to vector<4x256xf32>
    %22 = arith.subf %1, %21 : vector<4x256xf32>
    %23 = arith.mulf %22, %22 : vector<4x256xf32>
    %cst_12 = arith.constant dense<0.000000e+00> : vector<4xf32>
    %24 = vector.multi_reduction <add>, %23, %cst_12 [1] : vector<4x256xf32> to vector<4xf32>
    %25 = vector.shape_cast %24 : vector<4xf32> to vector<4x1xf32>
    %cst_13 = arith.constant 2.560000e+02 : f32
    %26 = vector.broadcast %cst_13 : f32 to vector<4x1xf32>
    %27 = arith.divf %25, %26 : vector<4x1xf32>
    %cst_14 = arith.constant 1.000000e+00 : f32
    %28 = vector.broadcast %cst_14 : f32 to vector<4x1xf32>
    %29 = arith.addf %28, %15 : vector<4x1xf32>
    %cst_15 = arith.constant 9.99999974E-6 : f32
    %30 = vector.broadcast %cst_15 : f32 to vector<4x1xf32>
    %31 = arith.addf %27, %30 : vector<4x1xf32>
    %32 = math.rsqrt %31 : vector<4x1xf32>
    %33 = arith.mulf %29, %32 : vector<4x1xf32>
    %34 = vector.broadcast %33 : vector<4x1xf32> to vector<4x256xf32>
    %35 = arith.mulf %34, %22 : vector<4x256xf32>
    %36 = vector.broadcast %16 : vector<4x1xf32> to vector<4x256xf32>
    %37 = arith.addf %35, %36 : vector<4x256xf32>
    %c0_16 = arith.constant 0 : index
    %c0_17 = arith.constant 0 : index
    %c0_18 = arith.constant 0 : index
    %38 = vector.load %arg5[%c0_16, %c0_17, %c0_18] : memref<1x4x256xf32, #tpu.memory_space<vmem>>, vector<1x4x256xf32>
    %39 = vector.shape_cast %38 : vector<1x4x256xf32> to vector<4x256xf32>
    %40 = vector.shape_cast %37 : vector<4x256xf32> to vector<1x4x256xf32>
    tpu.vector_store %arg5[%c0_16, %c0_17, %c0_18], %40 {strides = array<i32>} : memref<1x4x256xf32, #tpu.memory_space<vmem>>, vector<1x4x256xf32>,
    return
  }
  func.func @transform_0(%arg0: i32) -> (i32, i32, i32) {
    %c0_i32 = arith.constant 0 : i32
    %c0_i32_0 = arith.constant 0 : i32
    %c0_i32_1 = arith.constant 0 : i32
    return %arg0, %c0_i32, %c0_i32_0 : i32, i32, i32
  }
  func.func @transform_1(%arg0: i32) -> (i32, i32) {
    %c0_i32 = arith.constant 0 : i32
    %c0_i32_0 = arith.constant 0 : i32
    %c0_i32_1 = arith.constant 0 : i32
    return %c0_i32, %c0_i32_0 : i32, i32
  }
  func.func @transform_2(%arg0: i32) -> (i32, i32) {
    %c0_i32 = arith.constant 0 : i32
    %c0_i32_0 = arith.constant 0 : i32
    %c0_i32_1 = arith.constant 0 : i32
    return %c0_i32, %c0_i32_0 : i32, i32
  }
  func.func @transform_3(%arg0: i32) -> (i32, i32) {
    %c0_i32 = arith.constant 0 : i32
    %c0_i32_0 = arith.constant 0 : i32
    %c0_i32_1 = arith.constant 0 : i32
    return %c0_i32, %c0_i32_0 : i32, i32
  }
  func.func @transform_4(%arg0: i32) -> (i32, i32, i32) {
    %c0_i32 = arith.constant 0 : i32
    %c0_i32_0 = arith.constant 0 : i32
    %c0_i32_1 = arith.constant 0 : i32
    return %arg0, %c0_i32, %c0_i32_0 : i32, i32, i32
  }
}

</mosaic_0001>

<bundles_post_ra>
// kernel: tpu_custom_call.1
= control target key start
LH: loop header
LB: loop body
LE: loop exit
PB: predicated region body
PF: predicated region fallthrough
CT: control target
= control target key end

     0   :  { %9 = vsyncpa [#allocation3], 0  ;;  %s716_s0 = inlined_call_operand.vmem [shape: f32[2,4,256], index: 0, kind: input, shape index: {}]   ;;  %s717_s1 = inlined_call_operand.vmem [shape: f32[8,2], index: 1, kind: input, shape index: {}]   ;;  %s718_s2 = inlined_call_operand.hbm [shape: f32[8,8], index: 2, kind: input, shape index: {}]   ;;  %s719_s3 = inlined_call_operand.vmem [shape: f32[8,1], index: 3, kind: input, shape index: {}]   ;;  %s720_s4 = inlined_call_operand.hbm [shape: f32[2,4,256], index: 4, kind: output, shape index: {}]  }
   0x1   :  { %10 = vsyncpa [#allocation4], 0 }
   0x2   :  { %12 = vsyncpa [#allocation4 + $0x1], 0  ;;  %s615_s15 = smov 0   ;;  %s617_s16 = smov 0  }
   0x3   :  { %s619_s17 = smov 0   ;;  %s621_s18 = smov 0  }
   0x4 LB: > { %s636_s19 = sadd.s32 4294967295, %s584_s18   ;;  %s413_s20 = sadd.s32 4294967294, %s584_s18   ;;  %s584_s18 = sphi %s621_s18, %s726_s18   ;;  %s580_s17 = sphi %s619_s17, %s725_s17   ;;  %s576_s16 = sphi %s617_s16, %s724_s16   ;;  %s572_s15 = sphi %s615_s15, %s723_s15  }
   0x5   : > { %s640_s21 = sadd.s32 1, %s584_s18   ;;  %s114_s22 = sadd.s32 1, %s580_s17 }
   0x6   : > { %s111_s23 = ssub.s32 %s584_s18, %s640_s21  ;;  %p124_p0 = scmp.ne.s32.totalorder %s580_s17, %s576_s16 }
   0x7   : > { %p112_p1 = scmp.eq.s32.totalorder %s111_s23, 0  ;;  %p125_p2 = scmp.eq.s32.totalorder %s636_s19, 1 }
   0x8   : > { %p130_p3 = scmp.ne.s32.totalorder %s576_s16, %s572_s15  ;;  %p131_p4 = scmp.eq.s32.totalorder %s413_s20, 1 }
   0x9   : > { %s651_s24 = scalar_select %p112_p1, %s580_s17, %s114_s22  }
   0xa   : > { %p653_p5 = por %p125_p2, %p124_p0  ;;  %p657_p6 = por %p131_p4, %p130_p3 }
   0xb   : > { %p414_p7 = scmp.ge.s32.totalorder %s584_s18, 1  ;;  %p138_p8 = scmp.lt.s32.totalorder %s584_s18, 3 }
   0xc   : > { %p444_p9 = scmp.eq.s32.totalorder %s636_s19, 0  ;;  %s153_s29 = sshll.u32 %s718_s2, 4  ;;  %s154_s29 = int_to_ptr.hbm [resolvable:$true] %s153_s29 }
   0xd   : > { %p139_p10 = pnand %p414_p7, %p138_p8  ;;  %s586_s30 = smov [#allocation2]  }
   0xe   : > { %s155_s5 = sshll.u32 %s586_s30, 4  ;;  %s156_s5 = int_to_ptr.vmem [resolvable:$true] %s155_s5 }
   0xf   : > { %p436_p11 = pneg %p139_p10  ;;  %179 = sbr.rel (%p139_p10) target bundleno = 324 (0x144), region = 36 }
  0x11   : > { %p437_p12 = pnand %p444_p9, %p436_p11 }
  0x13   : > { %439 = dma.hbm_to_vmem [thread:$0]  (!%p437_p12), %s154_s29, 128, %s156_s5, [#allocation3]  }
  0x14   : > { %563 = dma.done.wait (%p444_p9), [#allocation3], 128  }
  0x15   : > { %565 = vsyncadd (%p444_p9), [#allocation3], 4294967168  ;;  %p206_p13 = scmp.lt.s32.totalorder %s636_s19, 1  ;;  %v587_v0 = vmov 0   ;;  %vm220_vm0 = vcmask 64512   ;;  %v213_v2 = vld [vmem:[%s717_s1] sm:$0xff]  ;;  %v244_v25 = vlaneseq  ;;  %v246_v29 = vstv %s636_s19 }
  0x16   : > { %483 = vset.pattern.permute.xlu0 %v587_v0  ;;  %v212_v3 = vld [vmem:[#allocation2] sm:$0xff]  ;;  %239 = vmatpush.msra.mxu0 %v213_v2  ;;  %vm259_vm1 = vcmask 1043456   ;;  %v214_v9 = vld [vmem:[%s719_s3] sm:$0xff]  ;;  %v588_v10 = vmov 256.0   ;;  %v589_v16 = vmov 839922192  }
  0x17   : > { %s207_s6 = scalar_select %p206_p13, %s636_s19, 1  ;;  %422 = vmatmul.msk.f32.vlgmr.msra.gmra.mxu0 %vm220_vm0, %v212_v3  ;;  %484 = vrcp.f32 %v588_v10  ;;  %v275_v17 = vunpack.c.l.s4 %v589_v16  ;;  %v245_v26 = vand.u32 127, %v244_v25  ;;  %vm249_vm4 = vcmask 15360  }
  0x18   : > { %s203_s20 = sand.u32 1, %s576_s16   ;;  %s429_s23 = sshll.u32 %s636_s19, 3 }
  0x19   : > { %s428_s7 = sshll.u32 %s207_s6, 3  ;;  %v276_v19 = vunpack.c.0.s8 %v275_v17  ;;  %vm247_vm3 = vcmp.eq.s32.totalorder %v245_v26, %v246_v29  ;;  %s419_s22 = sshll.u32 %s203_s20, 3 }
  0x1a   : > { %s210_s10 = scalar_lea.vmem %s716_s0, %s428_s7  ;;  %s337_s29 = scalar_lea.hbm %s720_s4, %s429_s23 }
  0x1b   : > { %v211_v1 = vld [vmem:[%s210_s10] sm:$0xff]  ;;  %s205_s30 = scalar_lea.vmem [#allocation5], %s419_s22  ;;  %s341_s6 = sshll.u32 %s337_s29, 4  ;;  %s342_s6 = int_to_ptr.hbm [resolvable:$true] %s341_s6 }
  0x1c   : > { %254 = vst [vmem:[#allocation1] ss:$2 sm:$0xff] %v211_v1  ;;  %s339_s5 = sshll.u32 %s205_s30, 4  ;;  %s326_s19 = scalar_lea.sflag [#allocation4], %s203_s20  ;;  %s340_s5 = int_to_ptr.vmem [resolvable:$true] %s339_s5 }
  0x1d   : > { %v485_v11 = vpop.eup %484  ;;  %s532_s7 = sshra.s32 %s342_s6, 4  ;;  %s538_s11 = scalar_lea.hbm %s720_s4, 16  ;;  %s533_s7 = int_to_ptr.hbm [resolvable:$true] %s532_s7 }
  0x1e   : > { %v266_v12 = vmul.f32 256.0, %v485_v11  ;;  %vm270_vm2 = vweird.f32 %v485_v11  ;;  %s534_s8 = scalar_lea.hbm %s533_s7, 8  ;;  %p539_p3 = scmp.lt.s32.totalorder %s533_s7, %s720_s4 }
  0x1f   : > { %p535_p0 = scmp.ne.s32.totalorder %s533_s7, %s534_s8  ;;  %p540_p4 = scmp.lt.s32.totalorder %s538_s11, %s534_s8 }
  0x20   : > { %v267_v13 = vsub.f32 1.0, %v266_v12 }
  0x21   : > { %p536_p1 = pnand %p535_p0, %p653_p5  ;;  %p541_p7 = por %p540_p4, %p539_p3 }
  0x22   : > { %v268_v14 = vmul.f32 %v485_v11, %v267_v13 }
  0x23   : > { %v255_v4 = vld.sshfl [vmem:[#allocation1] sm:$0xff pattern:$0x75316420]  ;;  %v256_v5 = vld.sshfl [vmem:[#allocation1 + $0x8] sm:$0xff pattern:$0x75316420]  ;;  %p537_p2 = pneg %p536_p1 }
  0x24   : > { %v260_v6 = vsel %vm259_vm1, %v255_v4, 0.0  ;;  %v261_v7 = vsel %vm259_vm1, %v256_v5, 0.0  ;;  %v269_v15 = vadd.f32 %v485_v11, %v268_v14 }
  0x25   : > { %v262_v8 = vadd.f32 %v261_v7, %v260_v6  ;;  %p542_p8 = pnand %p541_p7, %p537_p2 }
  0x26   : > { %v271_v18 = vsel %vm270_vm2, %v485_v11, %v269_v15 }
  0x27   : > { %263 = vadd.xlane.f32.xlu0 %v262_v8 }
  0x3b   : > { %217 = vperm.xlu0 %483, %v214_v9  }
  0x94   : > { %v241_v32 = vpop.f32.mrf.mxu0 }
  0x9a   : > { %v264_v20 = vpop.xlane.xlu0 %263 }
  0x9b   : > { %v272_v21 = vmul.f32 %v271_v18, %v264_v20 }
  0x9d   : > { %v277_v22 = vperm.slane %v272_v21, %v276_v19 }
  0x9f   : > { %v279_v23 = vsub.f32 %v211_v1, %v277_v22 }
  0xa1   : > { %v280_v24 = vmul.f32 %v279_v23, %v279_v23 }
  0xa3   : > { %282 = vst [vmem:[#allocation1] ss:$2 sm:$0xff] %v280_v24 }
  0xaa   : > { %v283_v27 = vld.sshfl [vmem:[#allocation1] sm:$0xff pattern:$0x75316420]  ;;  %v284_v28 = vld.sshfl [vmem:[#allocation1 + $0x8] sm:$0xff pattern:$0x75316420] }
  0xab   : > { %v287_v30 = vsel %vm259_vm1, %v283_v27, 0.0  ;;  %v288_v31 = vsel %vm259_vm1, %v284_v28, 0.0  ;;  %307 = vst [vmem:[#allocation1] ss:$2 sm:$0xff] %v279_v23 }
  0xac   : > { %v289_v33 = vadd.f32 %v288_v31, %v287_v30 }
  0xad   : > { %v218_v34 = vpop.permute.xlu0 %217 }
  0xae   : > { %290 = vadd.xlane.f32.xlu1 %v289_v33  ;;  %v242_v35 = vadd.f32 %v241_v32, %v218_v34 }
  0xb0   : > { %v248_v36 = vsel %vm247_vm3, %v242_v35, 0.0 }
  0xb1   : > { %v250_v37 = vsel %vm249_vm4, %v248_v36, 0.0 }
  0xb2   : > { %v308_v50 = vld.sshfl [vmem:[#allocation1] sm:$0xff pattern:$0x75316420]  ;;  %v309_v52 = vld.sshfl [vmem:[#allocation1 + $0x8] sm:$0xff pattern:$0x75316420] }
  0xb6   : > { %251 = vadd.xlane.f32.xlu1 %v250_v37 }
 0x121   : > { %v291_v38 = vpop.xlane.xlu1 %290 }
 0x122   : > { %v292_v39 = vmul.f32 %v291_v38, %v271_v18 }
 0x124   : > { %v294_v40 = vadd.f32 1e-05, %v292_v39 }
 0x126   : > { %486 = vrsqrt.f32 %v294_v40  ;;  %vm301_vm6 = vweird.f32 %v294_v40 }
 0x129   : > { %v252_v45 = vpop.xlane.xlu1 %251 }
 0x12a   : > { %v293_v47 = vadd.f32 1.0, %v252_v45  ;;  %v315_v55 = vrot.slane %v252_v45, 4 }
 0x12c   : > { %v487_v41 = vpop.eup %486 }
 0x12d   : > { %v296_v42 = vmul.f32 %v487_v41, %v294_v40  ;;  %vm302_vm5 = vweird.f32 %v487_v41 }
 0x12e   : > { %vm303_vm7 = vmor %vm301_vm6, %vm302_vm5 }
 0x12f   : > { %v297_v43 = vmul.f32 %v487_v41, %v296_v42 }
 0x131   : > { %v298_v44 = vmul.f32 0.5, %v297_v43 }
 0x133   : > { %v299_v46 = vsub.f32 1.5, %v298_v44 }
 0x135   : > { %v300_v48 = vmul.f32 %v487_v41, %v299_v46 }
 0x137   : > { %v304_v49 = vsel %vm303_vm7, %v487_v41, %v300_v48 }
 0x138   : > { %v305_v51 = vmul.f32 %v304_v49, %v293_v47 }
 0x13a   : > { %v312_v53 = vmul.f32 %v308_v50, %v305_v51  ;;  %v313_v54 = vmul.f32 %v309_v52, %v305_v51 }
 0x13c   : > { %v318_v56 = vadd.f32 %v315_v55, %v313_v54  ;;  %v317_v57 = vadd.f32 %v315_v55, %v312_v53 }
 0x13e   : > { %v321_v58 = vrot.slane %v318_v56, 4 }
 0x140   : > { %v322_v59 = vsel %vm259_vm1, %v317_v57, %v321_v58 }
 0x141   : > { %324 = vst [vmem:[%s205_s30] sm:$0xff] %v322_v59 }
 0x142   : > { %545 = shalt.err (!%p542_p8)
}
 0x143   : > { %434 = dma.vmem_to_hbm [thread:$0]  (%p653_p5), %s340_s5, 128, %s342_s6, %s326_s19  }
 0x144 PF: > { %p446_p9 = scmp.ge.s32.totalorder %s584_s18, 2  ;;  %s353_s14 = sand.u32 1, %s572_s15  }
 0x145   : > { %s354_s20 = scalar_lea.sflag [#allocation4], %s353_s14 }
 0x146   : > { %p441_p10 = pnand %p446_p9, %p657_p6 }
 0x148   : > { %p442_p11 = pneg %p441_p10 }
 0x14a   : > { %567 = dma.done.wait (%p442_p11), %s354_s20, 128  }
 0x14b   : > { %569 = vsyncadd (%p442_p11), %s354_s20, 4294967168  ;;  %p15_p12 = scmp.ge.s32.totalorder %s640_s21, 4   ;;  %s723_s15 = smov %s576_s16 }
 0x14c   : > { %s724_s16 = smov %s580_s17  ;;  %s725_s17 = smov %s651_s24 }
 0x14d   : > { %s726_s18 = smov %s640_s21  ;;  %17 = sbr.rel (!%p15_p12) target bundleno = 4 (0x4), region = 76 }
 0x152   :  { %360 = vsyncpa [#allocation3], 1 }
 0x153   :  { %362 = vsyncpa [#allocation3 + $0x1], 1 }
 0x154   :  { %363 = vsyncpa [#allocation4], 1 }
 0x155   :  { %365 = vsyncpa [#allocation4 + $0x1], 1 }

</bundles_post_ra>
